<compile_context>
chip_gen: v7x
topology: tpu7x:2x2x1
jax: 0.10.0
libtpu: 0.0.40
codegen_flags: <defaults>
</compile_context>

<pallas_src>
import jax
import jax.numpy as jnp
from jax.experimental import pallas as pl
from jax.experimental.pallas import tpu as pltpu

INPUT_SIZE = 300
HIDDEN_SIZE = 100
OUTPUT_SIZE = 1
HIDDEN_PAD = 128  # lane-aligned hidden dim (zero padding keeps results exact)


def _round_up(n, m):
    return ((n + m - 1) // m) * m


def _cdiv(a, b):
    return -(-a // b)


def dffnn_kernel(x_ref, w1_ref, b1_ref, w2_ref, b2_ref, o_ref):
    # fc1 on the MXU: [tb, 300] @ [300, 128], f32 accumulation (bf16 or f32 in).
    h = jnp.dot(x_ref[...], w1_ref[...], preferred_element_type=jnp.float32)
    # Bias + ReLU on the VPU, in f32 (v5e has no bf16 VPU).
    h = jnp.maximum(h + b1_ref[...], 0.0)  # (tb, 128) f32
    # fc2 has N=1.  Compute it lane-dense: contract w2's 128 hidden lanes
    # against h's hidden lanes -> (1, tb).  Same trans-B dot_general pattern
    # as flash attention's q @ k.T; the result is lane-dense so the store is
    # a full-width vst instead of tb/8 masked single-lane stores.
    out = jax.lax.dot_general(
        w2_ref[...], h,
        dimension_numbers=(((1,), (1,)), ((), ())),
        preferred_element_type=jnp.float32)  # (1, tb)
    o_ref[...] = (out + b2_ref[0, 0]).astype(o_ref.dtype)


def pad_params(w1, b1, w2, b2, *, compute_dtype=jnp.bfloat16):
    """One-time parameter preparation (do NOT call per forward pass).

    w1: [INPUT_SIZE, HIDDEN_SIZE] (pre-transposed vs. nn.Linear's [out, in])
    b1: [HIDDEN_SIZE]   w2: [HIDDEN_SIZE, OUTPUT_SIZE]   b2: [OUTPUT_SIZE]
    Returns (w1p, b1p, w2p, b2p) with hidden padded 100 -> 128 (exact) and W1
    cast to compute_dtype (bf16 by default; biases/w2 stay f32).
    """
    w1 = jnp.asarray(w1)
    w1p = (jnp.zeros((INPUT_SIZE, HIDDEN_PAD), compute_dtype)
           .at[:, :HIDDEN_SIZE].set(w1.astype(compute_dtype)))
    b1p = (jnp.zeros((1, HIDDEN_PAD), jnp.float32)
           .at[0, :HIDDEN_SIZE].set(jnp.asarray(b1, jnp.float32).reshape(-1)))
    w2p = (jnp.zeros((1, HIDDEN_PAD), jnp.float32)
           .at[0, :HIDDEN_SIZE].set(jnp.asarray(w2, jnp.float32).reshape(-1)))
    b2p = jnp.asarray(b2, jnp.float32).reshape(1, 1)
    return w1p, b1p, w2p, b2p


def _pick_tile(B, block_b, itemsize):
    if block_b is None:
        block_b = 8192 if itemsize <= 2 else 4096
    if B <= block_b:
        # Single full-batch tile: no padding, no HBM copy of x.
        return B, 1
    # Multi-tile: tb must be a multiple of 128 (lane-dense output block) and
    # we keep >= 4 grid steps so both v7x TensorCores get work.
    tb = min(block_b, max(1024, _round_up(_cdiv(B, 4), 128)))
    tb = max(128, (tb // 128) * 128)
    return tb, _cdiv(B, tb)


def dffnn_forward(x, w1p, b1p, w2p, b2p, *, block_b=None):
    """Fused fc1 -> ReLU -> fc2.  x: [B, INPUT_SIZE]; params from pad_params().

    For best HBM-roofline performance, store/produce x upstream in the same
    dtype as w1p (bf16 by default); the cast below is only a fallback and adds
    an extra read+write of x.
    """
    B = x.shape[0]
    compute_dtype = w1p.dtype
    if x.dtype != compute_dtype:
        x = x.astype(compute_dtype)  # fallback; prefer bf16-stored x upstream

    itemsize = jnp.dtype(compute_dtype).itemsize
    tb, num_tiles = _pick_tile(B, block_b, itemsize)

    # VMEM budget (v7x: 64 MiB physical / 32 MiB scoped default):
    #   2x double-buffered x tile + 2x double-buffered out tile
    #   + resident weights/biases + in-kernel f32 h / fc2 temporaries.
    vmem_bytes = (2 * tb * INPUT_SIZE * itemsize
                  + 2 * tb * 4
                  + INPUT_SIZE * HIDDEN_PAD * itemsize + 3 * HIDDEN_PAD * 4
                  + 3 * tb * HIDDEN_PAD * 4)
    vmem_limit = int(min(64 * 2**20, max(32 * 2**20, int(vmem_bytes * 1.25))))

    rows = num_tiles * tb
    flops = 2 * rows * (INPUT_SIZE * HIDDEN_PAD + HIDDEN_PAD)
    bytes_accessed = int(
        B * INPUT_SIZE * itemsize
        + INPUT_SIZE * HIDDEN_PAD * itemsize
        + 3 * HIDDEN_PAD * 4 + 4
        + rows * 4)

    out = pl.pallas_call(
        dffnn_kernel,
        out_shape=jax.ShapeDtypeStruct((num_tiles, tb), jnp.float32),
        grid=(num_tiles,),
        in_specs=[
            # x batch tile — streamed, double-buffered (ragged last tile OK:
            # garbage rows only feed discarded output entries).
            pl.BlockSpec((tb, INPUT_SIZE), lambda i: (i, 0)),
            # Weights/biases — same block every step => resident in VMEM.
            pl.BlockSpec((INPUT_SIZE, HIDDEN_PAD), lambda i: (0, 0)),
            pl.BlockSpec((1, HIDDEN_PAD), lambda i: (0, 0)),
            pl.BlockSpec((1, HIDDEN_PAD), lambda i: (0, 0)),
            # b2 scalar lives in SMEM.
            pl.BlockSpec((1, 1), lambda i: (0, 0),
                         memory_space=pltpu.MemorySpace.SMEM),
        ],
        # Lane-dense output block: (1, tb) per grid step.
        out_specs=pl.BlockSpec((1, tb), lambda i: (i, 0)),
        compiler_params=pltpu.CompilerParams(
            dimension_semantics=("parallel",),
            vmem_limit_bytes=vmem_limit),
        cost_estimate=pl.CostEstimate(
            flops=flops, transcendentals=0, bytes_accessed=bytes_accessed),
    )(x, w1p, b1p, w2p, b2p)

    # Restore (B, 1); rows from the ragged tail (if any) are discarded here.
    return out.reshape(-1)[:B].reshape(B, OUTPUT_SIZE)


def init_params(key):
    # Deterministic init mimicking nn.Linear's U(-1/sqrt(fan_in), 1/sqrt(fan_in)).
    k1, k2, k3, k4 = jax.random.split(key, 4)
    lim1 = 1.0 / jnp.sqrt(jnp.float32(INPUT_SIZE))
    lim2 = 1.0 / jnp.sqrt(jnp.float32(HIDDEN_SIZE))
    # Stored already transposed relative to PyTorch's [out, in] convention.
    w1 = jax.random.uniform(k1, (INPUT_SIZE, HIDDEN_SIZE), jnp.float32, -lim1, lim1)
    b1 = jax.random.uniform(k2, (HIDDEN_SIZE,), jnp.float32, -lim1, lim1)
    w2 = jax.random.uniform(k3, (HIDDEN_SIZE, OUTPUT_SIZE), jnp.float32, -lim2, lim2)
    b2 = jax.random.uniform(k4, (OUTPUT_SIZE,), jnp.float32, -lim2, lim2)
    return w1, b1, w2, b2


def reference_forward(x, w1, b1, w2, b2):
    h = jnp.maximum(x @ w1 + b1, 0.0)
    return h @ w2 + b2


if __name__ == "__main__":
    key = jax.random.PRNGKey(0)
    kx, kp = jax.random.split(key)
    w1, b1, w2, b2 = init_params(kp)

    # --- 1) Exact f32 path, small batch (single full-batch tile). ---
    batch = 8
    x32 = jax.random.normal(kx, (batch, INPUT_SIZE), jnp.float32)
    params_f32 = pad_params(w1, b1, w2, b2, compute_dtype=jnp.float32)
    out32 = jax.block_until_ready(dffnn_forward(x32, *params_f32))
    ref32 = reference_forward(x32, w1, b1, w2, b2)
    assert out32.shape == (batch, OUTPUT_SIZE)
    assert bool(jnp.allclose(out32, ref32, atol=1e-5, rtol=1e-5))

    # --- 2) Default bf16 path, multi-tile grid with a ragged last tile. ---
    B2 = 300
    x_f32 = jax.random.normal(jax.random.PRNGKey(1), (B2, INPUT_SIZE), jnp.float32)
    x_bf16 = x_f32.astype(jnp.bfloat16)            # x "stored upstream" in bf16
    params_bf16 = pad_params(w1, b1, w2, b2)        # default: bf16 W1, f32 b1/w2/b2
    out_bf = jax.block_until_ready(
        dffnn_forward(x_bf16, *params_bf16, block_b=128))  # 3 tiles, last ragged
    assert out_bf.shape == (B2, OUTPUT_SIZE)
    # Kernel math check: compare against the f32 reference run on the same
    # bf16-quantized inputs (only accumulation order differs).
    ref_q = reference_forward(x_bf16.astype(jnp.float32),
                              w1.astype(jnp.bfloat16).astype(jnp.float32),
                              b1, w2, b2)
    assert bool(jnp.allclose(out_bf, ref_q, atol=1e-4, rtol=1e-3))
    # Documented bf16-input accuracy vs. the true f32 reference (~1e-2 level).
    ref_full = reference_forward(x_f32, w1, b1, w2, b2)
    assert bool(jnp.max(jnp.abs(out_bf - ref_full)) < 5e-2)

    print("KERNEL_OK")
</pallas_src>

<mosaic_0001>
module attributes {stable_mosaic.version = 11 : i64} {
  func.func @dffnn_kernel(%arg0: i32, %arg1: memref<8x300xf32, #tpu.memory_space<vmem>>, %arg2: memref<300x128xf32, #tpu.memory_space<vmem>>, %arg3: memref<1x128xf32, #tpu.memory_space<vmem>>, %arg4: memref<1x128xf32, #tpu.memory_space<vmem>>, %arg5: memref<1x1xf32, #tpu.memory_space<smem>>, %arg6: memref<1x8xf32, #tpu.memory_space<vmem>>) attributes {dimension_semantics = [#tpu.dimension_semantics<parallel>], iteration_bounds = array<i64: 1>, scalar_prefetch = 0 : i64, scratch_operands = 0 : i64, tpu.core_type = #tpu.core_type<tc>, window_params = [{transform_indices = @transform_0, window_bounds = array<i64: 8, 300>}, {pipeline_mode = #tpu.pipeline_mode<synchronous>, transform_indices = @transform_1, window_bounds = array<i64: 300, 128>}, {pipeline_mode = #tpu.pipeline_mode<synchronous>, transform_indices = @transform_2, window_bounds = array<i64: 1, 128>}, {pipeline_mode = #tpu.pipeline_mode<synchronous>, transform_indices = @transform_3, window_bounds = array<i64: 1, 128>}, {transform_indices = @transform_4, window_bounds = array<i64: 1, 1>}, {transform_indices = @transform_5, window_bounds = array<i64: 1, 8>}]} {
    %c0 = arith.constant 0 : index
    %c0_0 = arith.constant 0 : index
    %0 = vector.load %arg1[%c0, %c0_0] : memref<8x300xf32, #tpu.memory_space<vmem>>, vector<8x300xf32>
    %c0_1 = arith.constant 0 : index
    %c0_2 = arith.constant 0 : index
    %1 = vector.load %arg2[%c0_1, %c0_2] : memref<300x128xf32, #tpu.memory_space<vmem>>, vector<300x128xf32>
    %cst = arith.constant dense<0.000000e+00> : vector<8x128xf32>
    %2 = tpu.matmul %0, %1, %cst {dimension_numbers = #tpu.dot_dimension_numbers<[1], [0], [0], [1], [0, 0, 1, 1], [], []>} : vector<8x300xf32>, vector<300x128xf32>, vector<8x128xf32> -> vector<8x128xf32>
    %c0_3 = arith.constant 0 : index
    %c0_4 = arith.constant 0 : index
    %3 = vector.load %arg3[%c0_3, %c0_4] : memref<1x128xf32, #tpu.memory_space<vmem>>, vector<1x128xf32>
    %4 = vector.broadcast %3 : vector<1x128xf32> to vector<8x128xf32>
    %5 = arith.addf %2, %4 : vector<8x128xf32>
    %cst_5 = arith.constant 0.000000e+00 : f32
    %6 = vector.broadcast %cst_5 : f32 to vector<8x128xf32>
    %7 = arith.maximumf %5, %6 : vector<8x128xf32>
    %c0_6 = arith.constant 0 : index
    %c0_7 = arith.constant 0 : index
    %8 = vector.load %arg4[%c0_6, %c0_7] : memref<1x128xf32, #tpu.memory_space<vmem>>, vector<1x128xf32>
    %cst_8 = arith.constant dense<0.000000e+00> : vector<1x8xf32>
    %9 = tpu.matmul %8, %7, %cst_8 {dimension_numbers = #tpu.dot_dimension_numbers<[1], [1], [0], [0], [0, 0, 1, 0], [], []>} : vector<1x128xf32>, vector<8x128xf32>, vector<1x8xf32> -> vector<1x8xf32>
    %c0_9 = arith.constant 0 : index
    %c0_10 = arith.constant 0 : index
    %10 = memref.load %arg5[%c0_9, %c0_10] : memref<1x1xf32, #tpu.memory_space<smem>>
    %11 = vector.broadcast %10 : f32 to vector<1x8xf32>
    %12 = arith.addf %9, %11 : vector<1x8xf32>
    %c0_11 = arith.constant 0 : index
    %c0_12 = arith.constant 0 : index
    %13 = vector.load %arg6[%c0_11, %c0_12] : memref<1x8xf32, #tpu.memory_space<vmem>>, vector<1x8xf32>
    tpu.vector_store %arg6[%c0_11, %c0_12], %12 {strides = array<i32>} : memref<1x8xf32, #tpu.memory_space<vmem>>, vector<1x8xf32>,
    return
  }
  func.func @transform_0(%arg0: i32) -> (i32, i32) {
    %c0_i32 = arith.constant 0 : i32
    %c0_i32_0 = arith.constant 0 : i32
    return %arg0, %c0_i32 : i32, i32
  }
  func.func @transform_1(%arg0: i32) -> (i32, i32) {
    %c0_i32 = arith.constant 0 : i32
    %c0_i32_0 = arith.constant 0 : i32
    %c0_i32_1 = arith.constant 0 : i32
    return %c0_i32, %c0_i32_0 : i32, i32
  }
  func.func @transform_2(%arg0: i32) -> (i32, i32) {
    %c0_i32 = arith.constant 0 : i32
    %c0_i32_0 = arith.constant 0 : i32
    %c0_i32_1 = arith.constant 0 : i32
    return %c0_i32, %c0_i32_0 : i32, i32
  }
  func.func @transform_3(%arg0: i32) -> (i32, i32) {
    %c0_i32 = arith.constant 0 : i32
    %c0_i32_0 = arith.constant 0 : i32
    %c0_i32_1 = arith.constant 0 : i32
    return %c0_i32, %c0_i32_0 : i32, i32
  }
  func.func @transform_4(%arg0: i32) -> (i32, i32) {
    %c0_i32 = arith.constant 0 : i32
    %c0_i32_0 = arith.constant 0 : i32
    %c0_i32_1 = arith.constant 0 : i32
    return %c0_i32, %c0_i32_0 : i32, i32
  }
  func.func @transform_5(%arg0: i32) -> (i32, i32) {
    %c0_i32 = arith.constant 0 : i32
    %c0_i32_0 = arith.constant 0 : i32
    return %arg0, %c0_i32 : i32, i32
  }
}

</mosaic_0001>

<bundles_post_ra>
// kernel: tpu_custom_call.1
= control target key start
LH: loop header
LB: loop body
LE: loop exit
PB: predicated region body
PF: predicated region fallthrough
CT: control target
= control target key end

     0   :  { %11 = vsyncpa [#allocation4], 0  ;;  %s625_s0 = inlined_call_operand.hbm [shape: f32[8,300], index: 0, kind: input, shape index: {}]   ;;  %s626_s1 = inlined_call_operand.hbm [shape: f32[300,128], index: 1, kind: input, shape index: {}]   ;;  %s627_s2 = inlined_call_operand.vmem [shape: f32[1,128], index: 2, kind: input, shape index: {}]   ;;  %s628_s3 = inlined_call_operand.vmem [shape: f32[1,128], index: 3, kind: input, shape index: {}]   ;;  %s629_s4 = inlined_call_operand.<no memory space> [shape: f32[1,1], index: 4, kind: input, shape index: {}]   ;;  %s630_s5 = inlined_call_operand.hbm [shape: f32[1,8], index: 5, kind: output, shape index: {}]  }
   0x1   :  { %12 = vsyncpa [#allocation7], 0 }
   0x2   :  { %13 = vsyncpa [#allocation5], 0  ;;  %s526_s18 = smov [#allocation3]   ;;  %s527_s20 = smov [#allocation6]  }
   0x3   :  { %s20_s19 = sshll.u32 %s526_s18, 4  ;;  %s29_s21 = sshll.u32 %s527_s20, 4  ;;  %s21_s19 = int_to_ptr.vmem [resolvable:$true] %s20_s19  ;;  %s565_s21 = int_to_ptr.vmem [resolvable:$true] %s29_s21 }
   0x4   :  { %s454_s24 = scalar_lea.hbm %s625_s0, 384 }
   0x5   :  { %p455_p0 = scmp.ne.s32.totalorder %s625_s0, %s454_s24  ;;  %p458_p1 = scmp.lt.u32.totalorder %s454_s24, %s625_s0 }
   0x7   :  { %p460_p2 = pnand %p458_p1, %p455_p0 }
   0x9   :  { %463 = shalt.err (!%p460_p2)
}
   0xa   :  { %s464_s29 = scalar_lea.vmem %s21_s19, 384  ;;  %p469_p4 = scmp.lt.s32.totalorder %s21_s19, %s21_s19 }
   0xb   :  { %p465_p3 = scmp.ne.s32.totalorder %s21_s19, %s464_s29  ;;  %p470_p5 = scmp.lt.s32.totalorder %s464_s29, %s464_s29 }
   0xd   :  { %p471_p6 = por %p470_p5, %p469_p4 }
   0xf   :  { %p472_p7 = pnand %p471_p6, %p465_p3 }
  0x11   :  { %475 = shalt.err (!%p472_p7)
}
  0x12   :  { %23 = dma.hbm_to_vmem [thread:$0]  %s625_s0, 384, %s21_s19, [#allocation4]  }
  0x13   :  { %s476_s9 = scalar_lea.hbm %s626_s1, 4864 }
  0x14   :  { %p477_p8 = scmp.ne.s32.totalorder %s626_s1, %s476_s9  ;;  %p480_p9 = scmp.lt.u32.totalorder %s476_s9, %s626_s1 }
  0x16   :  { %p482_p10 = pnand %p480_p9, %p477_p8 }
  0x18   :  { %485 = shalt.err (!%p482_p10)
}
  0x19   :  { %s486_s14 = scalar_lea.vmem %s565_s21, 4864  ;;  %p491_p12 = scmp.lt.s32.totalorder %s565_s21, %s565_s21 }
  0x1a   :  { %p487_p11 = scmp.ne.s32.totalorder %s565_s21, %s486_s14  ;;  %p492_p13 = scmp.lt.s32.totalorder %s486_s14, %s486_s14 }
  0x1c   :  { %p493_p0 = por %p492_p13, %p491_p12 }
  0x1e   :  { %p494_p1 = pnand %p493_p0, %p487_p11 }
  0x20   :  { %497 = shalt.err (!%p494_p1)
}
  0x21   :  { %s528_s0 = smov 128   ;;  %s529_s15 = smov 8  }
  0x22   :  { %35 = dma.hbm_to_vmem [thread:$0]  %s626_s1, 4864, %s565_s21, [#allocation7], %s528_s0, %s528_s0, %s529_s15  }
  0x23   :  { %520 = dma.done.wait [#allocation4], 384  }
  0x24   :  { %521 = vsyncadd [#allocation4], 4294966912 }
  0x25   :  { %522 = dma.done.wait [#allocation7], 4864  }
  0x26   :  { %523 = vsyncadd [#allocation7], 4294962432  ;;  %v530_v0 = vmov 0.0|0.0   ;;  %vm531_vm0 = vmmov 0   ;;  %v532_v1 = vmov 0.0   ;;  %v67_v2 = vld [vmem:[#allocation6 + $0x80] sm:$0xff] }
  0x27   :  { %435 = vmatprep.subr.bf16.mxu1 %v530_v0  ;;  %395 = vmatprep.mubr.msk.f32.mxu1 %vm531_vm0, %v532_v1  ;;  %v68_v3 = vld [vmem:[#allocation6 + $0x88] sm:$0xff]  ;;  %v51_v4 = vld [vmem:[#allocation6] sm:$0xff]  ;;  %v69_v7 = vld [vmem:[#allocation6 + $0x90] sm:$0xff]  ;;  %vm100_vm1 = vcmask 1043456   ;;  %vm533_vm2 = vmmov 1   ;;  %vm96_vm4 = vcmask 359424  }
  0x28   :  { %v403_v5 = vpack.c.bf16 %v68_v3, %v67_v2  ;;  %v52_v6 = vld [vmem:[#allocation6 + $0x8] sm:$0xff]  ;;  %v70_v8 = vld [vmem:[#allocation6 + $0x98] sm:$0xff]  ;;  %v53_v11 = vld [vmem:[#allocation6 + $0x10] sm:$0xff]  ;;  %s534_s23 = smov [#allocation8]   ;;  %vm318_vm5 = vcmask 57344  }
  0x29   :  { %v405_v9 = vpack.c.bf16 %v52_v6, %v51_v4  ;;  %v407_v10 = vpack.c.bf16 %v70_v8, %v69_v7  ;;  %v54_v12 = vld [vmem:[#allocation6 + $0x18] sm:$0xff]  ;;  %v71_v13 = vld [vmem:[#allocation6 + $0xa0] sm:$0xff]  ;;  %v72_v14 = vld [vmem:[#allocation6 + $0xa8] sm:$0xff]  ;;  %v247_v8 = vstv %s629_s4  ;;  %s326_s24 = sshll.u32 %s534_s23, 4  ;;  %s327_s24 = int_to_ptr.vmem [resolvable:$true] %s326_s24 }
  0x2a   :  { %404 = vmatprep.subr.bf16.mxu0 %v403_v5  ;;  %v409_v15 = vpack.c.bf16 %v54_v12, %v53_v11  ;;  %v411_v16 = vpack.c.bf16 %v72_v14, %v71_v13  ;;  %v55_v17 = vld [vmem:[#allocation6 + $0x20] sm:$0xff]  ;;  %v56_v18 = vld [vmem:[#allocation6 + $0x28] sm:$0xff]  ;;  %v73_v19 = vld [vmem:[#allocation6 + $0xb0] sm:$0xff]  ;;  %s502_s25 = scalar_lea.vmem %s327_s24, 32  ;;  %p503_p3 = scmp.lt.s32.totalorder %s327_s24, %s327_s24 }
  0x2b   :  { %406 = vmatpush3.bf16.msra.mxu0 %v405_v9  ;;  %v74_v20 = vld [vmem:[#allocation6 + $0xb8] sm:$0xff]  ;;  %v413_v21 = vpack.c.bf16 %v56_v18, %v55_v17  ;;  %v57_v22 = vld [vmem:[#allocation6 + $0x30] sm:$0xff]  ;;  %v83_v25 = vld [vmem:[#allocation6 + $0x100] sm:$0xff] }
  0x2c   :  { %408 = vmatprep.subr.bf16.mxu0 %v407_v10  ;;  %v415_v23 = vpack.c.bf16 %v74_v20, %v73_v19  ;;  %v58_v24 = vld [vmem:[#allocation6 + $0x38] sm:$0xff]  ;;  %v84_v26 = vld [vmem:[#allocation6 + $0x108] sm:$0xff]  ;;  %v75_v27 = vld [vmem:[#allocation6 + $0xc0] sm:$0xff] }
  0x2d   :  { %v76_v28 = vld [vmem:[#allocation6 + $0xc8] sm:$0xff]  ;;  %v436_v29 = vpack.c.bf16 %v84_v26, %v83_v25  ;;  %v85_v30 = vld [vmem:[#allocation6 + $0x110] sm:$0xff]  ;;  %v86_v31 = vld [vmem:[#allocation6 + $0x118] sm:$0xff]  ;;  %v417_v32 = vpack.c.bf16 %v58_v24, %v57_v22 }
  0x2e   :  { %v59_v33 = vld [vmem:[#allocation6 + $0x40] sm:$0xff]  ;;  %v439_v34 = vpack.c.bf16 %v86_v31, %v85_v30  ;;  %v49_v35 = vld [vmem:[#allocation3 + $0x8] sm:$0xff]  ;;  %v419_v36 = vpack.c.bf16 %v76_v28, %v75_v27  ;;  %v60_v37 = vld [vmem:[#allocation6 + $0x48] sm:$0xff] }
  0x2f   :  { %410 = vmatpush3.bf16.msra.mxu0 %v409_v15  ;;  %437 = vmatpush3.bf16.msra.mxu1 %v436_v29  ;;  %v87_v38 = vld [vmem:[#allocation6 + $0x120] sm:$0xff]  ;;  %v88_v39 = vld [vmem:[#allocation6 + $0x128] sm:$0xf]  ;;  %v77_v40 = vld [vmem:[#allocation6 + $0xd0] sm:$0xff]  ;;  %v421_v42 = vpack.c.bf16 %v60_v37, %v59_v33 }
  0x30   :  { %412 = vmatprep.subr.bf16.mxu0 %v411_v16  ;;  %438 = vmatprep.subr.bf16.mxu1 %v530_v0  ;;  %v78_v41 = vld [vmem:[#allocation6 + $0xd8] sm:$0xff]  ;;  %v442_v43 = vpack.c.bf16 %v88_v39, %v87_v38  ;;  %v61_v45 = vld [vmem:[#allocation6 + $0x50] sm:$0xff]  ;;  %vm443_vm3 = vmpackc.low %vm100_vm1, %vm533_vm2 }
  0x31   :  { %168 = vmatprep.mubr.f32.mxu0 %v49_v35  ;;  %v423_v44 = vpack.c.bf16 %v78_v41, %v77_v40  ;;  %v62_v46 = vld [vmem:[#allocation6 + $0x58] sm:$0xff]  ;;  %v79_v47 = vld [vmem:[#allocation6 + $0xe0] sm:$0xff]  ;;  %v80_v48 = vld [vmem:[#allocation6 + $0xe8] sm:$0xff] }
  0x32   :  { %v425_v49 = vpack.c.bf16 %v62_v46, %v61_v45  ;;  %v50_v50 = vld [vmem:[#allocation3 + $0x10] sm:$0xff]  ;;  %v427_v51 = vpack.c.bf16 %v80_v48, %v79_v47  ;;  %v63_v52 = vld [vmem:[#allocation6 + $0x60] sm:$0xff]  ;;  %v64_v53 = vld [vmem:[#allocation6 + $0x68] sm:$0xff] }
  0x33   :  { %414 = vmatpush3.bf16.msra.mxu0 %v413_v21  ;;  %440 = vmatpush3.bf16.msra.mxu1 %v439_v34  ;;  %v81_v54 = vld [vmem:[#allocation6 + $0xf0] sm:$0xff]  ;;  %v82_v55 = vld [vmem:[#allocation6 + $0xf8] sm:$0xff]  ;;  %v429_v56 = vpack.c.bf16 %v64_v53, %v63_v52  ;;  %v48_v61 = vld [vmem:[#allocation3] sm:$0xff] }
  0x34   :  { %416 = vmatprep.subr.bf16.mxu0 %v415_v23  ;;  %441 = vmatprep.subr.bf16.mxu1 %v530_v0  ;;  %v431_v57 = vpack.c.bf16 %v82_v55, %v81_v54  ;;  %v65_v58 = vld [vmem:[#allocation6 + $0x70] sm:$0xff]  ;;  %v66_v59 = vld [vmem:[#allocation6 + $0x78] sm:$0xff]  ;;  %v336_v3 = vld [vmem:[%s627_s2] ss:$0 sm:$0xff]  ;;  %s498_s2 = scalar_lea.vmem %s327_s24, 16 }
  0x35   :  { %v433_v60 = vpack.c.bf16 %v66_v59, %v65_v58  ;;  %v245_v7 = vld [vmem:[%s628_s3] sm:$0x1]  ;;  %p499_p2 = scmp.ne.s32.totalorder %s327_s24, %s498_s2  ;;  %p504_p4 = scmp.lt.s32.totalorder %s502_s25, %s498_s2 }
  0x37   :  { %418 = vmatpush3.bf16.msra.mxu0 %v417_v32  ;;  %444 = vmatpush3.bf16.msk.msra.mxu1 %vm443_vm3, %v442_v43  ;;  %p505_p5 = por %p504_p4, %p503_p3 }
  0x38   :  { %420 = vmatprep.subr.bf16.mxu0 %v419_v36  ;;  %398 = vmatprep.subr.mxu1 %v532_v1 }
  0x39   :  { %p506_p6 = pnand %p505_p5, %p499_p2 }
  0x3a   :  { %396 = vmatmul.mubr.msk.f32.vlgmr.msra.gmra.mrb[0].mxu1 %vm96_vm4, %v50_v50 }
  0x3b   :  { %422 = vmatpush3.bf16.msra.mxu0 %v421_v42  ;;  %400 = vmatprep.mubr.msk.f32.mxu1 %vm531_vm0, %v532_v1 }
  0x3c   :  { %424 = vmatprep.subr.bf16.mxu0 %v423_v44 }
  0x3f   :  { %426 = vmatpush3.bf16.msra.mxu0 %v425_v49 }
  0x40   :  { %428 = vmatprep.subr.bf16.mxu0 %v427_v51 }
  0x43   :  { %430 = vmatpush3.bf16.msra.mxu0 %v429_v56 }
  0x44   :  { %432 = vmatprep.subr.bf16.mxu0 %v431_v57 }
  0x47   :  { %434 = vmatpush3.bf16.msra.mxu0 %v433_v60 }
  0x4a   :  { %169 = vmatmul.mubr.f32.vlgmr.msra.gmra.mrb[0].mxu0 %v48_v61 }
 0x10d   :  { %v240_v62 = vpop.f32.mrb[0].mxu1 }
 0x10e   :  { %v397_v63 = vpop.f32.mrb[1].mxu1 }
 0x11d   :  { %v371_v0 = vpop.f32.mrb[0].mxu0 }
 0x11e   :  { %v372_v2 = vpop.f32.mrb[1].mxu0 }
 0x11f   :  { %v373_v4 = vadd.f32 %v372_v2, %v371_v0 }
 0x121   :  { %v171_v1 = vadd.f32 %v373_v4, %v336_v3 }
 0x123   :  { %v241_v5 = vadd.f32 %v240_v62, %v171_v1 }
 0x125   :  { %v244_v6 = vmax.f32 %v241_v5, 0.0 }
 0x127   :  { %399 = vmatpush3.xpose.msra.mxu1 %v244_v6 }
 0x12a   :  { %401 = vmatmul.mubr.f32.vlgmr.msra.gmra.mrb[2].mxu1 %v245_v7 }
 0x1fd   :  { %v314_v9 = vpop.f32.mrb[2].mxu1 }
 0x1fe   :  { %v315_v10 = vadd.f32 %v314_v9, %v247_v8  ;;  %v402_v11 = vpop.f32.mrb[3].mxu1 }
 0x200   :  { %319 = vst.msk [vmem:[#allocation8] sm:$0x1] %vm318_vm5, %v315_v10 }
 0x201   :  { %509 = shalt.err (!%p506_p6)
}
 0x202   :  { %s510_s4 = scalar_lea.hbm %s630_s5, 16 }
 0x203   :  { %p511_p7 = scmp.ne.s32.totalorder %s630_s5, %s510_s4  ;;  %p514_p8 = scmp.lt.u32.totalorder %s510_s4, %s630_s5 }
 0x205   :  { %p516_p9 = pnand %p514_p8, %p511_p7 }
 0x207   :  { %519 = shalt.err (!%p516_p9)
}
 0x208   :  { %329 = dma.vmem_to_hbm [thread:$0]  %s327_s24, 16, %s630_s5, [#allocation5]  }
 0x209   :  { %524 = dma.done.wait [#allocation5], 16  }
 0x20a   :  { %525 = vsyncadd [#allocation5], 4294967280 }
 0x20b   :  { %333 = vsyncpa [#allocation4], 1 }
 0x20c   :  { %334 = vsyncpa [#allocation7], 1 }
 0x20d   :  { %335 = vsyncpa [#allocation5], 1 }

</bundles_post_ra>
